<compile_context>
chip_gen: v7x
topology: tpu7x:2x2x1
jax: 0.10.0
libtpu: 0.0.40
codegen_flags: <defaults>
</compile_context>

<pallas_src>
import jax
import jax.numpy as jnp
from jax.experimental import pallas as pl
from jax.experimental.pallas import tpu as pltpu


def _round_up(n, m):
    return ((n + m - 1) // m) * m


def mlp_kernel(x_ref,
               w1_ref, b1_ref,
               w2_ref, b2_ref,
               w3_ref, b3_ref,
               w4_ref, b4_ref,
               w5_ref, b5_ref,
               o_ref):
    # compute dtype for MXU operands (f32 or bf16); accumulation / bias / tanh stay f32.
    cdt = w1_ref.dtype
    h = x_ref[...].astype(cdt)
    for w_ref, b_ref in ((w1_ref, b1_ref), (w2_ref, b2_ref),
                         (w3_ref, b3_ref), (w4_ref, b4_ref)):
        z = jnp.dot(h, w_ref[...], preferred_element_type=jnp.float32) + b_ref[...]
        h = jnp.tanh(z).astype(cdt)
    y = jnp.dot(h, w5_ref[...], preferred_element_type=jnp.float32) + b5_ref[...]
    o_ref[...] = y.astype(o_ref.dtype)


def mlp_forward(x, params, *, batch_tile=256, compute_dtype=jnp.float32,
                lane_pad=128):
    """x: (B, n_in) f32. params: list of (W, b) with W: (in, out), b: (1, out).

    Returns (B, n_out) f32, identical math to the PyTorch module's forward.
    """
    B, n_in = x.shape
    n_out = params[-1][0].shape[1]

    # --- pad feature dims to lane-dense multiples of 128 (exact: see header) ---
    padded_params = []
    for w, b in params:
        di, do = w.shape
        dip, dop = _round_up(di, lane_pad), _round_up(do, lane_pad)
        w_p = jnp.pad(w, ((0, dip - di), (0, dop - do))).astype(compute_dtype)
        b_p = jnp.pad(b, ((0, 0), (0, dop - do))).astype(jnp.float32)
        padded_params.append((w_p, b_p))

    n_in_pad = padded_params[0][0].shape[0]
    n_out_pad = padded_params[-1][0].shape[1]

    # --- pad / tile the batch axis (sublane multiple of 8) ---
    tb = min(batch_tile, _round_up(B, 8))
    tb = _round_up(tb, 8)
    B_pad = _round_up(B, tb)
    x_p = jnp.pad(x, ((0, B_pad - B), (0, n_in_pad - n_in))).astype(jnp.float32)
    n_tiles = B_pad // tb

    flat = []
    for w, b in padded_params:
        flat.extend([w, b])

    def _full_spec(a):
        # weights/biases: same block for every grid step -> stays VMEM-resident.
        return pl.BlockSpec(a.shape, lambda i: (0,) * a.ndim)

    in_specs = [pl.BlockSpec((tb, n_in_pad), lambda i: (i, 0))]
    in_specs += [_full_spec(a) for a in flat]
    out_spec = pl.BlockSpec((tb, n_out_pad), lambda i: (i, 0))

    # --- advisory cost estimate for the XLA scheduler ---
    layer_dims = [w.shape for w, _ in padded_params]
    flops = 2 * B_pad * sum(di * do for di, do in layer_dims)
    transcendentals = B_pad * sum(do for _, do in layer_dims[:-1])  # 4 tanh layers
    bytes_accessed = (x_p.size * x_p.dtype.itemsize
                      + sum(a.size * a.dtype.itemsize for a in flat)
                      + B_pad * n_out_pad * 4)
    cost = pl.CostEstimate(flops=flops, transcendentals=transcendentals,
                           bytes_accessed=bytes_accessed)

    out_padded = pl.pallas_call(
        mlp_kernel,
        out_shape=jax.ShapeDtypeStruct((B_pad, n_out_pad), jnp.float32),
        grid=(n_tiles,),
        in_specs=in_specs,
        out_specs=out_spec,
        compiler_params=pltpu.CompilerParams(
            dimension_semantics=("parallel",)),
        cost_estimate=cost,
    )(x_p, *flat)

    return out_padded[:B, :n_out]


def init_params(key, n_in, hidden, n_out):
    """Deterministic init mimicking torch.nn.Linear's U(-1/sqrt(fan_in), 1/sqrt(fan_in))."""
    dims = [(n_in, hidden), (hidden, hidden), (hidden, hidden),
            (hidden, hidden), (hidden, n_out)]
    params = []
    for (fan_in, fan_out) in dims:
        key, kw, kb = jax.random.split(key, 3)
        bound = 1.0 / jnp.sqrt(jnp.float32(fan_in))
        w = jax.random.uniform(kw, (fan_in, fan_out), jnp.float32, -bound, bound)
        b = jax.random.uniform(kb, (1, fan_out), jnp.float32, -bound, bound)
        params.append((w, b))
    return params


def reference_forward(x, params):
    h = x
    for i, (w, b) in enumerate(params):
        h = h @ w + b
        if i < len(params) - 1:
            h = jnp.tanh(h)
    return h


if __name__ == "__main__":
    NumberOfInputs, hidden_neurons, NumberOfOutputs = 16, 32, 8
    batch = 8

    key = jax.random.PRNGKey(0)
    key, kx = jax.random.split(key)
    x = jax.random.normal(kx, (batch, NumberOfInputs), jnp.float32)
    params = init_params(key, NumberOfInputs, hidden_neurons, NumberOfOutputs)

    # --- small-batch, f32 path: exact check vs JAX reference ---
    out = jax.block_until_ready(mlp_forward(x, params))
    ref = reference_forward(x, params)
    assert out.shape == (batch, NumberOfOutputs)
    assert jnp.allclose(out, ref, atol=1e-5, rtol=1e-5), "f32 mismatch vs JAX reference"

    # --- large batch, bf16 MXU operands, gridded + parallel over batch tiles ---
    big_batch = 512
    key, kb = jax.random.split(key)
    xb = jax.random.normal(kb, (big_batch, NumberOfInputs), jnp.float32)
    out_b = jax.block_until_ready(
        mlp_forward(xb, params, batch_tile=256, compute_dtype=jnp.bfloat16))
    ref_b = reference_forward(xb, params)
    assert out_b.shape == (big_batch, NumberOfOutputs)
    assert jnp.all(jnp.isfinite(out_b))
    assert jnp.allclose(out_b, ref_b, atol=1e-1, rtol=1e-1), "bf16 mismatch vs JAX reference"

    print("KERNEL_OK")
</pallas_src>

<mosaic_0001>
module attributes {stable_mosaic.version = 11 : i64} {
  func.func @mlp_kernel(%arg0: i32, %arg1: memref<8x128xf32, #tpu.memory_space<vmem>>, %arg2: memref<128x128xf32, #tpu.memory_space<vmem>>, %arg3: memref<1x128xf32, #tpu.memory_space<vmem>>, %arg4: memref<128x128xf32, #tpu.memory_space<vmem>>, %arg5: memref<1x128xf32, #tpu.memory_space<vmem>>, %arg6: memref<128x128xf32, #tpu.memory_space<vmem>>, %arg7: memref<1x128xf32, #tpu.memory_space<vmem>>, %arg8: memref<128x128xf32, #tpu.memory_space<vmem>>, %arg9: memref<1x128xf32, #tpu.memory_space<vmem>>, %arg10: memref<128x128xf32, #tpu.memory_space<vmem>>, %arg11: memref<1x128xf32, #tpu.memory_space<vmem>>, %arg12: memref<8x128xf32, #tpu.memory_space<vmem>>) attributes {dimension_semantics = [#tpu.dimension_semantics<parallel>], iteration_bounds = array<i64: 1>, scalar_prefetch = 0 : i64, scratch_operands = 0 : i64, tpu.core_type = #tpu.core_type<tc>, window_params = [{transform_indices = @transform_0, window_bounds = array<i64: 8, 128>}, {pipeline_mode = #tpu.pipeline_mode<synchronous>, transform_indices = @transform_1, window_bounds = array<i64: 128, 128>}, {pipeline_mode = #tpu.pipeline_mode<synchronous>, transform_indices = @transform_2, window_bounds = array<i64: 1, 128>}, {pipeline_mode = #tpu.pipeline_mode<synchronous>, transform_indices = @transform_3, window_bounds = array<i64: 128, 128>}, {pipeline_mode = #tpu.pipeline_mode<synchronous>, transform_indices = @transform_4, window_bounds = array<i64: 1, 128>}, {pipeline_mode = #tpu.pipeline_mode<synchronous>, transform_indices = @transform_5, window_bounds = array<i64: 128, 128>}, {pipeline_mode = #tpu.pipeline_mode<synchronous>, transform_indices = @transform_6, window_bounds = array<i64: 1, 128>}, {pipeline_mode = #tpu.pipeline_mode<synchronous>, transform_indices = @transform_7, window_bounds = array<i64: 128, 128>}, {pipeline_mode = #tpu.pipeline_mode<synchronous>, transform_indices = @transform_8, window_bounds = array<i64: 1, 128>}, {pipeline_mode = #tpu.pipeline_mode<synchronous>, transform_indices = @transform_9, window_bounds = array<i64: 128, 128>}, {pipeline_mode = #tpu.pipeline_mode<synchronous>, transform_indices = @transform_10, window_bounds = array<i64: 1, 128>}, {transform_indices = @transform_11, window_bounds = array<i64: 8, 128>}]} {
    %c0 = arith.constant 0 : index
    %c0_0 = arith.constant 0 : index
    %0 = vector.load %arg1[%c0, %c0_0] : memref<8x128xf32, #tpu.memory_space<vmem>>, vector<8x128xf32>
    %c0_1 = arith.constant 0 : index
    %c0_2 = arith.constant 0 : index
    %1 = vector.load %arg2[%c0_1, %c0_2] : memref<128x128xf32, #tpu.memory_space<vmem>>, vector<128x128xf32>
    %cst = arith.constant dense<0.000000e+00> : vector<8x128xf32>
    %2 = tpu.matmul %0, %1, %cst {dimension_numbers = #tpu.dot_dimension_numbers<[1], [0], [0], [1], [0, 0, 1, 1], [], []>} : vector<8x128xf32>, vector<128x128xf32>, vector<8x128xf32> -> vector<8x128xf32>
    %c0_3 = arith.constant 0 : index
    %c0_4 = arith.constant 0 : index
    %3 = vector.load %arg3[%c0_3, %c0_4] : memref<1x128xf32, #tpu.memory_space<vmem>>, vector<1x128xf32>
    %4 = vector.broadcast %3 : vector<1x128xf32> to vector<8x128xf32>
    %5 = arith.addf %2, %4 : vector<8x128xf32>
    %6 = math.tanh %5 : vector<8x128xf32>
    %c0_5 = arith.constant 0 : index
    %c0_6 = arith.constant 0 : index
    %7 = vector.load %arg4[%c0_5, %c0_6] : memref<128x128xf32, #tpu.memory_space<vmem>>, vector<128x128xf32>
    %cst_7 = arith.constant dense<0.000000e+00> : vector<8x128xf32>
    %8 = tpu.matmul %6, %7, %cst_7 {dimension_numbers = #tpu.dot_dimension_numbers<[1], [0], [0], [1], [0, 0, 1, 1], [], []>} : vector<8x128xf32>, vector<128x128xf32>, vector<8x128xf32> -> vector<8x128xf32>
    %c0_8 = arith.constant 0 : index
    %c0_9 = arith.constant 0 : index
    %9 = vector.load %arg5[%c0_8, %c0_9] : memref<1x128xf32, #tpu.memory_space<vmem>>, vector<1x128xf32>
    %10 = vector.broadcast %9 : vector<1x128xf32> to vector<8x128xf32>
    %11 = arith.addf %8, %10 : vector<8x128xf32>
    %12 = math.tanh %11 : vector<8x128xf32>
    %c0_10 = arith.constant 0 : index
    %c0_11 = arith.constant 0 : index
    %13 = vector.load %arg6[%c0_10, %c0_11] : memref<128x128xf32, #tpu.memory_space<vmem>>, vector<128x128xf32>
    %cst_12 = arith.constant dense<0.000000e+00> : vector<8x128xf32>
    %14 = tpu.matmul %12, %13, %cst_12 {dimension_numbers = #tpu.dot_dimension_numbers<[1], [0], [0], [1], [0, 0, 1, 1], [], []>} : vector<8x128xf32>, vector<128x128xf32>, vector<8x128xf32> -> vector<8x128xf32>
    %c0_13 = arith.constant 0 : index
    %c0_14 = arith.constant 0 : index
    %15 = vector.load %arg7[%c0_13, %c0_14] : memref<1x128xf32, #tpu.memory_space<vmem>>, vector<1x128xf32>
    %16 = vector.broadcast %15 : vector<1x128xf32> to vector<8x128xf32>
    %17 = arith.addf %14, %16 : vector<8x128xf32>
    %18 = math.tanh %17 : vector<8x128xf32>
    %c0_15 = arith.constant 0 : index
    %c0_16 = arith.constant 0 : index
    %19 = vector.load %arg8[%c0_15, %c0_16] : memref<128x128xf32, #tpu.memory_space<vmem>>, vector<128x128xf32>
    %cst_17 = arith.constant dense<0.000000e+00> : vector<8x128xf32>
    %20 = tpu.matmul %18, %19, %cst_17 {dimension_numbers = #tpu.dot_dimension_numbers<[1], [0], [0], [1], [0, 0, 1, 1], [], []>} : vector<8x128xf32>, vector<128x128xf32>, vector<8x128xf32> -> vector<8x128xf32>
    %c0_18 = arith.constant 0 : index
    %c0_19 = arith.constant 0 : index
    %21 = vector.load %arg9[%c0_18, %c0_19] : memref<1x128xf32, #tpu.memory_space<vmem>>, vector<1x128xf32>
    %22 = vector.broadcast %21 : vector<1x128xf32> to vector<8x128xf32>
    %23 = arith.addf %20, %22 : vector<8x128xf32>
    %24 = math.tanh %23 : vector<8x128xf32>
    %c0_20 = arith.constant 0 : index
    %c0_21 = arith.constant 0 : index
    %25 = vector.load %arg10[%c0_20, %c0_21] : memref<128x128xf32, #tpu.memory_space<vmem>>, vector<128x128xf32>
    %cst_22 = arith.constant dense<0.000000e+00> : vector<8x128xf32>
    %26 = tpu.matmul %24, %25, %cst_22 {dimension_numbers = #tpu.dot_dimension_numbers<[1], [0], [0], [1], [0, 0, 1, 1], [], []>} : vector<8x128xf32>, vector<128x128xf32>, vector<8x128xf32> -> vector<8x128xf32>
    %c0_23 = arith.constant 0 : index
    %c0_24 = arith.constant 0 : index
    %27 = vector.load %arg11[%c0_23, %c0_24] : memref<1x128xf32, #tpu.memory_space<vmem>>, vector<1x128xf32>
    %28 = vector.broadcast %27 : vector<1x128xf32> to vector<8x128xf32>
    %29 = arith.addf %26, %28 : vector<8x128xf32>
    %c0_25 = arith.constant 0 : index
    %c0_26 = arith.constant 0 : index
    %30 = vector.load %arg12[%c0_25, %c0_26] : memref<8x128xf32, #tpu.memory_space<vmem>>, vector<8x128xf32>
    tpu.vector_store %arg12[%c0_25, %c0_26], %29 {strides = array<i32>} : memref<8x128xf32, #tpu.memory_space<vmem>>, vector<8x128xf32>,
    return
  }
  func.func @transform_0(%arg0: i32) -> (i32, i32) {
    %c0_i32 = arith.constant 0 : i32
    %c0_i32_0 = arith.constant 0 : i32
    return %arg0, %c0_i32 : i32, i32
  }
  func.func @transform_1(%arg0: i32) -> (i32, i32) {
    %c0_i32 = arith.constant 0 : i32
    %c0_i32_0 = arith.constant 0 : i32
    %c0_i32_1 = arith.constant 0 : i32
    return %c0_i32, %c0_i32_0 : i32, i32
  }
  func.func @transform_2(%arg0: i32) -> (i32, i32) {
    %c0_i32 = arith.constant 0 : i32
    %c0_i32_0 = arith.constant 0 : i32
    %c0_i32_1 = arith.constant 0 : i32
    return %c0_i32, %c0_i32_0 : i32, i32
  }
  func.func @transform_3(%arg0: i32) -> (i32, i32) {
    %c0_i32 = arith.constant 0 : i32
    %c0_i32_0 = arith.constant 0 : i32
    %c0_i32_1 = arith.constant 0 : i32
    return %c0_i32, %c0_i32_0 : i32, i32
  }
  func.func @transform_4(%arg0: i32) -> (i32, i32) {
    %c0_i32 = arith.constant 0 : i32
    %c0_i32_0 = arith.constant 0 : i32
    %c0_i32_1 = arith.constant 0 : i32
    return %c0_i32, %c0_i32_0 : i32, i32
  }
  func.func @transform_5(%arg0: i32) -> (i32, i32) {
    %c0_i32 = arith.constant 0 : i32
    %c0_i32_0 = arith.constant 0 : i32
    %c0_i32_1 = arith.constant 0 : i32
    return %c0_i32, %c0_i32_0 : i32, i32
  }
  func.func @transform_6(%arg0: i32) -> (i32, i32) {
    %c0_i32 = arith.constant 0 : i32
    %c0_i32_0 = arith.constant 0 : i32
    %c0_i32_1 = arith.constant 0 : i32
    return %c0_i32, %c0_i32_0 : i32, i32
  }
  func.func @transform_7(%arg0: i32) -> (i32, i32) {
    %c0_i32 = arith.constant 0 : i32
    %c0_i32_0 = arith.constant 0 : i32
    %c0_i32_1 = arith.constant 0 : i32
    return %c0_i32, %c0_i32_0 : i32, i32
  }
  func.func @transform_8(%arg0: i32) -> (i32, i32) {
    %c0_i32 = arith.constant 0 : i32
    %c0_i32_0 = arith.constant 0 : i32
    %c0_i32_1 = arith.constant 0 : i32
    return %c0_i32, %c0_i32_0 : i32, i32
  }
  func.func @transform_9(%arg0: i32) -> (i32, i32) {
    %c0_i32 = arith.constant 0 : i32
    %c0_i32_0 = arith.constant 0 : i32
    %c0_i32_1 = arith.constant 0 : i32
    return %c0_i32, %c0_i32_0 : i32, i32
  }
  func.func @transform_10(%arg0: i32) -> (i32, i32) {
    %c0_i32 = arith.constant 0 : i32
    %c0_i32_0 = arith.constant 0 : i32
    %c0_i32_1 = arith.constant 0 : i32
    return %c0_i32, %c0_i32_0 : i32, i32
  }
  func.func @transform_11(%arg0: i32) -> (i32, i32) {
    %c0_i32 = arith.constant 0 : i32
    %c0_i32_0 = arith.constant 0 : i32
    return %arg0, %c0_i32 : i32, i32
  }
}

</mosaic_0001>

<bundles_post_ra>
// kernel: tpu_custom_call.1
= control target key start
LH: loop header
LB: loop body
LE: loop exit
PB: predicated region body
PF: predicated region fallthrough
CT: control target
= control target key end

     0   :  { %16 = vsyncpa [#allocation3], 0  ;;  %s1413_s0 = inlined_call_operand.hbm [shape: f32[8,128], index: 0, kind: input, shape index: {}]   ;;  %s1414_s1 = inlined_call_operand.hbm [shape: f32[128,128], index: 1, kind: input, shape index: {}]   ;;  %s1415_s2 = inlined_call_operand.vmem [shape: f32[1,128], index: 2, kind: input, shape index: {}]   ;;  %s1416_s3 = inlined_call_operand.hbm [shape: f32[128,128], index: 3, kind: input, shape index: {}]   ;;  %s1417_s4 = inlined_call_operand.vmem [shape: f32[1,128], index: 4, kind: input, shape index: {}]   ;;  %s1418_s5 = inlined_call_operand.hbm [shape: f32[128,128], index: 5, kind: input, shape index: {}]   ;;  %s1419_s6 = inlined_call_operand.vmem [shape: f32[1,128], index: 6, kind: input, shape index: {}]   ;;  %s1420_s7 = inlined_call_operand.hbm [shape: f32[128,128], index: 7, kind: input, shape index: {}]   ;;  %s1421_s8 = inlined_call_operand.vmem [shape: f32[1,128], index: 8, kind: input, shape index: {}]   ;;  %s1422_s9 = inlined_call_operand.hbm [shape: f32[128,128], index: 9, kind: input, shape index: {}]   ;;  %s1423_s10 = inlined_call_operand.vmem [shape: f32[1,128], index: 10, kind: input, shape index: {}]   ;;  %s1424_s11 = inlined_call_operand.hbm [shape: f32[8,128], index: 11, kind: output, shape index: {}]  }
   0x1   :  { %17 = vsyncpa [#allocation6], 0 }
   0x2   :  { %18 = vsyncpa [#allocation9], 0 }
   0x3   :  { %19 = vsyncpa [#allocation12], 0 }
   0x4   :  { %20 = vsyncpa [#allocation4], 0  ;;  %s1177_s17 = smov [#allocation5]   ;;  %s1013_s21 = scalar_lea.hbm %s1414_s1, 2048 }
   0x5   :  { %s36_s18 = sshll.u32 %s1177_s17, 4  ;;  %p1014_p0 = scmp.ne.s32.totalorder %s1414_s1, %s1013_s21  ;;  %s37_s18 = int_to_ptr.vmem [resolvable:$true] %s36_s18 }
   0x6   :  { %p1017_p1 = scmp.lt.u32.totalorder %s1013_s21, %s1414_s1 }
   0x8   :  { %p1019_p2 = pnand %p1017_p1, %p1014_p0 }
   0xa   :  { %1022 = shalt.err (!%p1019_p2)
}
   0xb   :  { %s1023_s26 = scalar_lea.vmem %s37_s18, 2048  ;;  %p1028_p4 = scmp.lt.s32.totalorder %s37_s18, %s37_s18 }
   0xc   :  { %p1024_p3 = scmp.ne.s32.totalorder %s37_s18, %s1023_s26  ;;  %p1029_p5 = scmp.lt.s32.totalorder %s1023_s26, %s1023_s26 }
   0xe   :  { %p1030_p6 = por %p1029_p5, %p1028_p4 }
  0x10   :  { %p1031_p7 = pnand %p1030_p6, %p1024_p3 }
  0x12   :  { %1034 = shalt.err (!%p1031_p7)
}
  0x13   :  { %s1178_s27 = smov 128   ;;  %s1179_s28 = smov 8  }
  0x14   :  { %42 = dma.hbm_to_vmem [thread:$0]  %s1414_s1, 2048, %s37_s18, [#allocation6], %s1178_s27, %s1178_s27, %s1179_s28  }
  0x15   :  { %s1180_s12 = smov [#allocation8]   ;;  %s1181_s14 = smov [#allocation2]  }
  0x16   :  { %s64_s13 = sshll.u32 %s1180_s12, 4  ;;  %s27_s15 = sshll.u32 %s1181_s14, 4  ;;  %s65_s13 = int_to_ptr.vmem [resolvable:$true] %s64_s13  ;;  %s28_s15 = int_to_ptr.vmem [resolvable:$true] %s27_s15 }
  0x17   :  { %s1035_s19 = scalar_lea.hbm %s1418_s5, 2048 }
  0x18   :  { %p1036_p8 = scmp.ne.s32.totalorder %s1418_s5, %s1035_s19  ;;  %p1039_p9 = scmp.lt.u32.totalorder %s1035_s19, %s1418_s5 }
  0x1a   :  { %p1041_p10 = pnand %p1039_p9, %p1036_p8 }
  0x1c   :  { %1044 = shalt.err (!%p1041_p10)
}
  0x1d   :  { %s1045_s1 = scalar_lea.vmem %s65_s13, 2048  ;;  %p1050_p12 = scmp.lt.s32.totalorder %s65_s13, %s65_s13 }
  0x1e   :  { %p1046_p11 = scmp.ne.s32.totalorder %s65_s13, %s1045_s1  ;;  %p1051_p13 = scmp.lt.s32.totalorder %s1045_s1, %s1045_s1 }
  0x20   :  { %p1052_p0 = por %p1051_p13, %p1050_p12 }
  0x22   :  { %p1053_p1 = pnand %p1052_p0, %p1046_p11 }
  0x24   :  { %1056 = shalt.err (!%p1053_p1)
}
  0x25   :  { %70 = dma.hbm_to_vmem [thread:$0]  %s1418_s5, 2048, %s65_s13, [#allocation9], %s1178_s27, %s1178_s27, %s1179_s28  }
  0x26   :  { %s1057_s29 = scalar_lea.hbm %s1413_s0, 128 }
  0x27   :  { %p1058_p2 = scmp.ne.s32.totalorder %s1413_s0, %s1057_s29  ;;  %p1061_p3 = scmp.lt.u32.totalorder %s1057_s29, %s1413_s0 }
  0x29   :  { %p1063_p4 = pnand %p1061_p3, %p1058_p2 }
  0x2b   :  { %1066 = shalt.err (!%p1063_p4)
}
  0x2c   :  { %s1067_s17 = scalar_lea.vmem %s28_s15, 128  ;;  %p1072_p6 = scmp.lt.s32.totalorder %s28_s15, %s28_s15 }
  0x2d   :  { %p1068_p5 = scmp.ne.s32.totalorder %s28_s15, %s1067_s17  ;;  %p1073_p7 = scmp.lt.s32.totalorder %s1067_s17, %s1067_s17 }
  0x2f   :  { %p1074_p8 = por %p1073_p7, %p1072_p6 }
  0x31   :  { %p1075_p9 = pnand %p1074_p8, %p1068_p5 }
  0x33   :  { %1078 = shalt.err (!%p1075_p9)
}
  0x34   :  { %30 = dma.hbm_to_vmem [thread:$0]  %s1413_s0, 128, %s28_s15, [#allocation3]  }
  0x35   :  { %s1182_s19 = smov [#allocation7]   ;;  %s1183_s21 = smov [#allocation10]  }
  0x36   :  { %s50_s20 = sshll.u32 %s1182_s19, 4  ;;  %s78_s22 = sshll.u32 %s1183_s21, 4  ;;  %s51_s20 = int_to_ptr.vmem [resolvable:$true] %s50_s20  ;;  %s79_s22 = int_to_ptr.vmem [resolvable:$true] %s78_s22 }
  0x37   :  { %s1079_s18 = scalar_lea.hbm %s1416_s3, 2048 }
  0x38   :  { %p1080_p10 = scmp.ne.s32.totalorder %s1416_s3, %s1079_s18  ;;  %p1083_p11 = scmp.lt.u32.totalorder %s1079_s18, %s1416_s3 }
  0x3a   :  { %p1085_p12 = pnand %p1083_p11, %p1080_p10 }
  0x3c   :  { %1088 = shalt.err (!%p1085_p12)
}
  0x3d   :  { %s1089_s0 = scalar_lea.vmem %s51_s20, 2048  ;;  %p1094_p0 = scmp.lt.s32.totalorder %s51_s20, %s51_s20 }
  0x3e   :  { %p1090_p13 = scmp.ne.s32.totalorder %s51_s20, %s1089_s0  ;;  %p1095_p1 = scmp.lt.s32.totalorder %s1089_s0, %s1089_s0 }
  0x40   :  { %p1096_p2 = por %p1095_p1, %p1094_p0 }
  0x42   :  { %p1097_p3 = pnand %p1096_p2, %p1090_p13 }
  0x44   :  { %1100 = shalt.err (!%p1097_p3)
}
  0x45   :  { %56 = dma.hbm_to_vmem [thread:$0]  %s1416_s3, 2048, %s51_s20, [#allocation6], %s1178_s27, %s1178_s27, %s1179_s28  }
  0x46   :  { %s1101_s16 = scalar_lea.hbm %s1420_s7, 2048 }
  0x47   :  { %p1102_p4 = scmp.ne.s32.totalorder %s1420_s7, %s1101_s16  ;;  %p1105_p5 = scmp.lt.u32.totalorder %s1101_s16, %s1420_s7 }
  0x49   :  { %p1107_p6 = pnand %p1105_p5, %p1102_p4 }
  0x4b   :  { %1110 = shalt.err (!%p1107_p6)
}
  0x4c   :  { %s1111_s21 = scalar_lea.vmem %s79_s22, 2048  ;;  %p1116_p8 = scmp.lt.s32.totalorder %s79_s22, %s79_s22 }
  0x4d   :  { %p1112_p7 = scmp.ne.s32.totalorder %s79_s22, %s1111_s21  ;;  %p1117_p9 = scmp.lt.s32.totalorder %s1111_s21, %s1111_s21 }
  0x4f   :  { %p1118_p10 = por %p1117_p9, %p1116_p8 }
  0x51   :  { %p1119_p11 = pnand %p1118_p10, %p1112_p7 }
  0x53   :  { %1122 = shalt.err (!%p1119_p11)
}
  0x54   :  { %84 = dma.hbm_to_vmem [thread:$0]  %s1420_s7, 2048, %s79_s22, [#allocation9], %s1178_s27, %s1178_s27, %s1179_s28  }
  0x55   :  { %s1184_s23 = smov [#allocation11]   ;;  %s1123_s25 = scalar_lea.hbm %s1422_s9, 2048 }
  0x56   :  { %s92_s1 = sshll.u32 %s1184_s23, 4  ;;  %p1124_p12 = scmp.ne.s32.totalorder %s1422_s9, %s1123_s25  ;;  %s93_s1 = int_to_ptr.vmem [resolvable:$true] %s92_s1 }
  0x57   :  { %p1127_p13 = scmp.lt.u32.totalorder %s1123_s25, %s1422_s9 }
  0x59   :  { %p1129_p0 = pnand %p1127_p13, %p1124_p12 }
  0x5b   :  { %1132 = shalt.err (!%p1129_p0)
}
  0x5c   :  { %s1133_s30 = scalar_lea.vmem %s93_s1, 2048  ;;  %p1138_p2 = scmp.lt.s32.totalorder %s93_s1, %s93_s1 }
  0x5d   :  { %p1134_p1 = scmp.ne.s32.totalorder %s93_s1, %s1133_s30  ;;  %p1139_p3 = scmp.lt.s32.totalorder %s1133_s30, %s1133_s30 }
  0x5f   :  { %p1140_p4 = por %p1139_p3, %p1138_p2 }
  0x61   :  { %p1141_p5 = pnand %p1140_p4, %p1134_p1 }
  0x63   :  { %1144 = shalt.err (!%p1141_p5)
}
  0x64   :  { %98 = dma.hbm_to_vmem [thread:$0]  %s1422_s9, 2048, %s93_s1, [#allocation12], %s1178_s27, %s1178_s27, %s1179_s28  }
  0x65   :  { %1167 = dma.done.wait [#allocation3], 128  }
  0x66   :  { %1168 = vsyncadd [#allocation3], 4294967168 }
  0x67   :  { %1169 = dma.done.wait [#allocation6], 4096  }
  0x68   :  { %1170 = vsyncadd [#allocation6], 4294963200 }
  0x69   :  { %1171 = dma.done.wait [#allocation9], 4096  }
  0x6a   :  { %1172 = vsyncadd [#allocation9], 4294963200 }
  0x6b   :  { %1173 = dma.done.wait [#allocation12], 2048  }
  0x6c   :  { %1174 = vsyncadd [#allocation12], 4294965248  ;;  %v1185_v0 = vmov 0.0|0.0   ;;  %vm1186_vm0 = vmmov 0   ;;  %v1187_v1 = vmov 0.0   ;;  %v120_v2 = vld [vmem:[#allocation5] sm:$0xff] }
  0x6d   :  { %873 = vmatprep.subr.bf16.mxu0 %v1185_v0  ;;  %730 = vmatprep.mubr.msk.f32.mxu0 %vm1186_vm0, %v1187_v1  ;;  %v121_v3 = vld [vmem:[#allocation5 + $0x8] sm:$0xff]  ;;  %v122_v4 = vld [vmem:[#allocation5 + $0x10] sm:$0xff]  ;;  %v123_v6 = vld [vmem:[#allocation5 + $0x18] sm:$0xff]  ;;  %s1188_s5 = smov [#allocation13]  }
  0x6e   :  { %897 = vmatprep.subr.bf16.mxu1 %v1185_v0  ;;  %765 = vmatprep.mubr.msk.f32.mxu1 %vm1186_vm0, %v1187_v1  ;;  %v874_v5 = vpack.c.bf16 %v121_v3, %v120_v2  ;;  %v877_v7 = vpack.c.bf16 %v123_v6, %v122_v4  ;;  %v124_v8 = vld [vmem:[#allocation5 + $0x20] sm:$0xff]  ;;  %v125_v9 = vld [vmem:[#allocation5 + $0x28] sm:$0xff]  ;;  %v216_v12 = vld [vmem:[#allocation7 + $0x10] sm:$0xff]  ;;  %s596_s13 = sshll.u32 %s1188_s5, 4  ;;  %s597_s13 = int_to_ptr.vmem [resolvable:$true] %s596_s13 }
  0x6f   :  { %v214_v10 = vld [vmem:[#allocation7] sm:$0xff]  ;;  %v215_v11 = vld [vmem:[#allocation7 + $0x8] sm:$0xff]  ;;  %v217_v13 = vld [vmem:[#allocation7 + $0x18] sm:$0xff]  ;;  %v880_v14 = vpack.c.bf16 %v125_v9, %v124_v8  ;;  %s1145_s19 = scalar_lea.vmem %s597_s13, 128  ;;  %p1150_p7 = scmp.lt.s32.totalorder %s597_s13, %s597_s13 }
  0x70   :  { %875 = vmatpush3.bf16.msra.mxu0 %v874_v5  ;;  %v898_v15 = vpack.c.bf16 %v215_v11, %v214_v10  ;;  %v126_v16 = vld [vmem:[#allocation5 + $0x30] sm:$0xff]  ;;  %v127_v17 = vld [vmem:[#allocation5 + $0x38] sm:$0xff]  ;;  %v901_v18 = vpack.c.bf16 %v217_v13, %v216_v12  ;;  %v218_v19 = vld [vmem:[#allocation7 + $0x20] sm:$0xff]  ;;  %p1146_p6 = scmp.ne.s32.totalorder %s597_s13, %s1145_s19  ;;  %p1151_p8 = scmp.lt.s32.totalorder %s1145_s19, %s1145_s19 }
  0x71   :  { %876 = vmatprep.subr.bf16.mxu0 %v1185_v0  ;;  %v219_v20 = vld [vmem:[#allocation7 + $0x28] sm:$0xff]  ;;  %v883_v21 = vpack.c.bf16 %v127_v17, %v126_v16  ;;  %v128_v22 = vld [vmem:[#allocation5 + $0x40] sm:$0xff]  ;;  %v220_v25 = vld [vmem:[#allocation7 + $0x30] sm:$0xff] }
  0x72   :  { %899 = vmatpush3.bf16.msra.mxu1 %v898_v15  ;;  %v129_v23 = vld [vmem:[#allocation5 + $0x48] sm:$0xff]  ;;  %v904_v24 = vpack.c.bf16 %v219_v20, %v218_v19  ;;  %v221_v26 = vld [vmem:[#allocation7 + $0x38] sm:$0xff]  ;;  %v130_v28 = vld [vmem:[#allocation5 + $0x50] sm:$0xff]  ;;  %p1152_p9 = por %p1151_p8, %p1150_p7 }
  0x73   :  { %900 = vmatprep.subr.bf16.mxu1 %v1185_v0  ;;  %v886_v27 = vpack.c.bf16 %v129_v23, %v128_v22  ;;  %v131_v29 = vld [vmem:[#allocation5 + $0x58] sm:$0xff]  ;;  %v907_v30 = vpack.c.bf16 %v221_v26, %v220_v25  ;;  %v222_v31 = vld [vmem:[#allocation7 + $0x40] sm:$0xff]  ;;  %v223_v32 = vld [vmem:[#allocation7 + $0x48] sm:$0xff] }
  0x74   :  { %878 = vmatpush3.bf16.msra.mxu0 %v877_v7  ;;  %v889_v33 = vpack.c.bf16 %v131_v29, %v130_v28  ;;  %v132_v34 = vld [vmem:[#allocation5 + $0x60] sm:$0xff]  ;;  %v133_v35 = vld [vmem:[#allocation5 + $0x68] sm:$0xff]  ;;  %v910_v36 = vpack.c.bf16 %v223_v32, %v222_v31  ;;  %v134_v38 = vld [vmem:[#allocation5 + $0x70] sm:$0xff]  ;;  %p1153_p10 = pnand %p1152_p9, %p1146_p6 }
  0x75   :  { %879 = vmatprep.subr.bf16.mxu0 %v1185_v0  ;;  %v892_v37 = vpack.c.bf16 %v133_v35, %v132_v34  ;;  %v135_v39 = vld [vmem:[#allocation5 + $0x78] sm:$0xff]  ;;  %v224_v42 = vld [vmem:[#allocation7 + $0x50] sm:$0xff]  ;;  %v226_v45 = vld [vmem:[#allocation7 + $0x60] sm:$0xff] }
  0x76   :  { %902 = vmatpush3.bf16.msra.mxu1 %v901_v18  ;;  %v895_v40 = vpack.c.bf16 %v135_v39, %v134_v38  ;;  %v119_v41 = vld [vmem:[#allocation2] sm:$0xff]  ;;  %v227_v46 = vld [vmem:[#allocation7 + $0x68] sm:$0xff]  ;;  %v228_v48 = vld [vmem:[#allocation7 + $0x70] sm:$0xff] }
  0x77   :  { %903 = vmatprep.subr.bf16.mxu1 %v1185_v0  ;;  %v225_v43 = vld [vmem:[#allocation7 + $0x58] sm:$0xff]  ;;  %v916_v47 = vpack.c.bf16 %v227_v46, %v226_v45  ;;  %v308_v51 = vld [vmem:[#allocation8] sm:$0xff]  ;;  %v309_v52 = vld [vmem:[#allocation8 + $0x8] sm:$0xff] }
  0x78   :  { %881 = vmatpush3.bf16.msra.mxu0 %v880_v14  ;;  %v913_v44 = vpack.c.bf16 %v225_v43, %v224_v42  ;;  %v229_v49 = vld [vmem:[#allocation7 + $0x78] sm:$0xff]  ;;  %v310_v53 = vld [vmem:[#allocation8 + $0x10] sm:$0xff]  ;;  %v922_v54 = vpack.c.bf16 %v309_v52, %v308_v51  ;;  %v312_v57 = vld [vmem:[#allocation8 + $0x20] sm:$0xff] }
  0x79   :  { %882 = vmatprep.subr.bf16.mxu0 %v1185_v0  ;;  %v919_v50 = vpack.c.bf16 %v229_v49, %v228_v48  ;;  %v311_v55 = vld [vmem:[#allocation8 + $0x18] sm:$0xff]  ;;  %v313_v58 = vld [vmem:[#allocation8 + $0x28] sm:$0xff]  ;;  %v314_v60 = vld [vmem:[#allocation8 + $0x30] sm:$0xff] }
  0x7a   :  { %905 = vmatpush3.bf16.msra.mxu1 %v904_v24  ;;  %v925_v56 = vpack.c.bf16 %v311_v55, %v310_v53  ;;  %v928_v59 = vpack.c.bf16 %v313_v58, %v312_v57  ;;  %v315_v61 = vld [vmem:[#allocation8 + $0x38] sm:$0xff]  ;;  %v316_v63 = vld [vmem:[#allocation8 + $0x40] sm:$0xff]  ;;  %v317_v2 = vld [vmem:[#allocation8 + $0x48] sm:$0xff] }
  0x7b   :  { %906 = vmatprep.subr.bf16.mxu1 %v1185_v0  ;;  %v931_v62 = vpack.c.bf16 %v315_v61, %v314_v60  ;;  %v934_v3 = vpack.c.bf16 %v317_v2, %v316_v63  ;;  %v608_v4 = vld [vmem:[%s1415_s2] ss:$0 sm:$0xff]  ;;  %v318_v9 = vld [vmem:[#allocation8 + $0x50] sm:$0xff]  ;;  %v320_v12 = vld [vmem:[#allocation8 + $0x60] sm:$0xff] }
  0x7c   :  { %884 = vmatpush3.bf16.msra.mxu0 %v883_v21  ;;  %v319_v10 = vld [vmem:[#allocation8 + $0x58] sm:$0xff]  ;;  %v321_v13 = vld [vmem:[#allocation8 + $0x68] sm:$0xff]  ;;  %v322_v15 = vld [vmem:[#allocation8 + $0x70] sm:$0xff] }
  0x7d   :  { %885 = vmatprep.subr.bf16.mxu0 %v1185_v0  ;;  %v937_v11 = vpack.c.bf16 %v319_v10, %v318_v9  ;;  %v940_v14 = vpack.c.bf16 %v321_v13, %v320_v12  ;;  %v323_v16 = vld [vmem:[#allocation8 + $0x78] sm:$0xff]  ;;  %v402_v18 = vld [vmem:[#allocation10] sm:$0xff]  ;;  %v403_v19 = vld [vmem:[#allocation10 + $0x8] sm:$0xff] }
  0x7e   :  { %908 = vmatpush3.bf16.msra.mxu1 %v907_v30  ;;  %v943_v17 = vpack.c.bf16 %v323_v16, %v322_v15  ;;  %v404_v20 = vld [vmem:[#allocation10 + $0x10] sm:$0xff]  ;;  %v946_v21 = vpack.c.bf16 %v403_v19, %v402_v18  ;;  %v405_v22 = vld [vmem:[#allocation10 + $0x18] sm:$0xff]  ;;  %v406_v24 = vld [vmem:[#allocation10 + $0x20] sm:$0xff] }
  0x7f   :  { %909 = vmatprep.subr.bf16.mxu1 %v1185_v0  ;;  %v949_v23 = vpack.c.bf16 %v405_v22, %v404_v20  ;;  %v407_v25 = vld [vmem:[#allocation10 + $0x28] sm:$0xff]  ;;  %v409_v28 = vld [vmem:[#allocation10 + $0x38] sm:$0xff]  ;;  %v410_v30 = vld [vmem:[#allocation10 + $0x40] sm:$0xff] }
  0x80   :  { %887 = vmatpush3.bf16.msra.mxu0 %v886_v27  ;;  %v952_v26 = vpack.c.bf16 %v407_v25, %v406_v24  ;;  %v408_v27 = vld [vmem:[#allocation10 + $0x30] sm:$0xff]  ;;  %v411_v31 = vld [vmem:[#allocation10 + $0x48] sm:$0xff]  ;;  %v413_v39 = vld [vmem:[#allocation10 + $0x58] sm:$0xff] }
  0x81   :  { %888 = vmatprep.subr.bf16.mxu0 %v1185_v0  ;;  %v955_v29 = vpack.c.bf16 %v409_v28, %v408_v27  ;;  %v958_v32 = vpack.c.bf16 %v411_v31, %v410_v30  ;;  %v412_v38 = vld [vmem:[#allocation10 + $0x50] sm:$0xff]  ;;  %v415_v42 = vld [vmem:[#allocation10 + $0x68] sm:$0xff]  ;;  %v417_v45 = vld [vmem:[#allocation10 + $0x78] sm:$0xff] }
  0x82   :  { %911 = vmatpush3.bf16.msra.mxu1 %v910_v36  ;;  %v497_v48 = vld [vmem:[#allocation11 + $0x8] sm:$0xff]  ;;  %v498_v49 = vld [vmem:[#allocation11 + $0x10] sm:$0xff]  ;;  %v500_v52 = vld [vmem:[#allocation11 + $0x20] sm:$0xff] }
  0x83   :  { %912 = vmatprep.subr.bf16.mxu1 %v1185_v0  ;;  %v501_v53 = vld [vmem:[#allocation11 + $0x28] sm:$0xff]  ;;  %v502_v55 = vld [vmem:[#allocation11 + $0x30] sm:$0xff]  ;;  %v504_v58 = vld [vmem:[#allocation11 + $0x40] sm:$0xff] }
  0x84   :  { %890 = vmatpush3.bf16.msra.mxu0 %v889_v33  ;;  %v609_v33 = vld [vmem:[%s1417_s4] ss:$0 sm:$0xff]  ;;  %v510_v10 = vld [vmem:[#allocation11 + $0x70] sm:$0xff] }
  0x85   :  { %891 = vmatprep.subr.bf16.mxu0 %v1185_v0  ;;  %v610_v61 = vld [vmem:[%s1419_s6] ss:$0 sm:$0xff] }
  0x86   :  { %914 = vmatpush3.bf16.msra.mxu1 %v913_v44  ;;  %v416_v44 = vld [vmem:[#allocation10 + $0x70] sm:$0xff]  ;;  %v611_v13 = vld [vmem:[%s1421_s8] ss:$0 sm:$0xff] }
  0x87   :  { %915 = vmatprep.subr.bf16.mxu1 %v1185_v0  ;;  %v967_v46 = vpack.c.bf16 %v417_v45, %v416_v44  ;;  %v612_v18 = vld [vmem:[%s1423_s10] ss:$0 sm:$0xff] }
  0x88   :  { %893 = vmatpush3.bf16.msra.mxu0 %v892_v37 }
  0x89   :  { %894 = vmatprep.subr.bf16.mxu0 %v1185_v0 }
  0x8a   :  { %917 = vmatpush3.bf16.msra.mxu1 %v916_v47  ;;  %v496_v47 = vld [vmem:[#allocation11] sm:$0xff] }
  0x8b   :  { %918 = vmatprep.subr.bf16.mxu1 %v1185_v0 }
  0x8c   :  { %896 = vmatpush3.bf16.msra.mxu0 %v895_v40  ;;  %v961_v40 = vpack.c.bf16 %v413_v39, %v412_v38 }
  0x8d   :  { %921 = vmatprep.subr.bf16.mxu0 %v1185_v0 }
  0x8e   :  { %920 = vmatpush3.bf16.msra.mxu1 %v919_v50  ;;  %v499_v50 = vld [vmem:[#allocation11 + $0x18] sm:$0xff] }
  0x8f   :  { %731 = vmatmul.mubr.f32.vlgmr.msra.gmra.mrb[0].mxu0 %v119_v41  ;;  %945 = vmatprep.subr.bf16.mxu1 %v1185_v0  ;;  %v414_v41 = vld [vmem:[#allocation10 + $0x60] sm:$0xff]  ;;  %v973_v51 = vpack.c.bf16 %v499_v50, %v498_v49 }
  0x90   :  { %800 = vmatprep.mubr.msk.f32.mxu0 %vm1186_vm0, %v1187_v1  ;;  %923 = vmatpush3.bf16.msra.mxu0 %v922_v54  ;;  %v964_v43 = vpack.c.bf16 %v415_v42, %v414_v41  ;;  %v976_v54 = vpack.c.bf16 %v501_v53, %v500_v52 }
  0x91   :  { %924 = vmatprep.subr.bf16.mxu0 %v1185_v0 }
  0x94   :  { %926 = vmatpush3.bf16.msra.mxu0 %v925_v56  ;;  %v503_v56 = vld [vmem:[#allocation11 + $0x38] sm:$0xff] }
  0x95   :  { %927 = vmatprep.subr.bf16.mxu0 %v1185_v0  ;;  %v979_v57 = vpack.c.bf16 %v503_v56, %v502_v55 }
  0x98   :  { %929 = vmatpush3.bf16.msra.mxu0 %v928_v59  ;;  %v505_v59 = vld [vmem:[#allocation11 + $0x48] sm:$0xff] }
  0x99   :  { %930 = vmatprep.subr.bf16.mxu0 %v1185_v0  ;;  %v982_v60 = vpack.c.bf16 %v505_v59, %v504_v58 }
  0x9c   :  { %932 = vmatpush3.bf16.msra.mxu0 %v931_v62 }
  0x9d   :  { %933 = vmatprep.subr.bf16.mxu0 %v1185_v0 }
  0xa0   :  { %935 = vmatpush3.bf16.msra.mxu0 %v934_v3 }
  0xa1   :  { %936 = vmatprep.subr.bf16.mxu0 %v1185_v0 }
  0xa4   :  { %938 = vmatpush3.bf16.msra.mxu0 %v937_v11  ;;  %v511_v11 = vld [vmem:[#allocation11 + $0x78] sm:$0xff] }
  0xa5   :  { %939 = vmatprep.subr.bf16.mxu0 %v1185_v0  ;;  %v991_v12 = vpack.c.bf16 %v511_v11, %v510_v10 }
  0xa8   :  { %941 = vmatpush3.bf16.msra.mxu0 %v940_v14 }
  0xa9   :  { %942 = vmatprep.subr.bf16.mxu0 %v1185_v0 }
  0xac   :  { %944 = vmatpush3.bf16.msra.mxu0 %v943_v17 }
  0xad   :  { %969 = vmatprep.subr.bf16.mxu0 %v1185_v0 }
 0x162   :  { %v209_v5 = vpop.f32.mrb[0].mxu0 }
 0x163   :  { %v210_v6 = vadd.f32 %v608_v4, %v209_v5  ;;  %v732_v7 = vpop.f32.mrb[1].mxu0  ;;  %v506_v4 = vld [vmem:[#allocation11 + $0x50] sm:$0xff]  ;;  %v507_v5 = vld [vmem:[#allocation11 + $0x58] sm:$0xff] }
 0x164   :  { %v508_v7 = vld [vmem:[#allocation11 + $0x60] sm:$0xff] }
 0x165   :  { %1005 = vtanh.f32 %v210_v6  ;;  %v985_v6 = vpack.c.bf16 %v507_v5, %v506_v4 }
 0x16f   :  { %v1006_v8 = vpop.eup %1005 }
 0x170   :  { %766 = vmatmul.mubr.f32.vlgmr.msra.gmra.mrb[0].mxu1 %v1006_v8  ;;  %v509_v8 = vld [vmem:[#allocation11 + $0x68] sm:$0xff] }
 0x171   :  { %835 = vmatprep.mubr.msk.f32.mxu1 %vm1186_vm0, %v1187_v1  ;;  %947 = vmatpush3.bf16.msra.mxu1 %v946_v21  ;;  %v988_v9 = vpack.c.bf16 %v509_v8, %v508_v7 }
 0x172   :  { %948 = vmatprep.subr.bf16.mxu1 %v1185_v0 }
 0x175   :  { %950 = vmatpush3.bf16.msra.mxu1 %v949_v23 }
 0x176   :  { %951 = vmatprep.subr.bf16.mxu1 %v1185_v0 }
 0x179   :  { %953 = vmatpush3.bf16.msra.mxu1 %v952_v26 }
 0x17a   :  { %954 = vmatprep.subr.bf16.mxu1 %v1185_v0 }
 0x17d   :  { %956 = vmatpush3.bf16.msra.mxu1 %v955_v29 }
 0x17e   :  { %957 = vmatprep.subr.bf16.mxu1 %v1185_v0 }
 0x181   :  { %959 = vmatpush3.bf16.msra.mxu1 %v958_v32 }
 0x182   :  { %960 = vmatprep.subr.bf16.mxu1 %v1185_v0 }
 0x185   :  { %962 = vmatpush3.bf16.msra.mxu1 %v961_v40 }
 0x186   :  { %963 = vmatprep.subr.bf16.mxu1 %v1185_v0 }
 0x189   :  { %965 = vmatpush3.bf16.msra.mxu1 %v964_v43 }
 0x18a   :  { %966 = vmatprep.subr.bf16.mxu1 %v1185_v0 }
 0x18d   :  { %968 = vmatpush3.bf16.msra.mxu1 %v967_v46 }
 0x243   :  { %v303_v34 = vpop.f32.mrb[0].mxu1 }
 0x244   :  { %v304_v35 = vadd.f32 %v609_v33, %v303_v34  ;;  %v767_v36 = vpop.f32.mrb[1].mxu1 }
 0x246   :  { %1007 = vtanh.f32 %v304_v35 }
 0x250   :  { %v1008_v37 = vpop.eup %1007 }
 0x251   :  { %801 = vmatmul.mubr.f32.vlgmr.msra.gmra.mrb[2].mxu0 %v1008_v37 }
 0x252   :  { %870 = vmatprep.mubr.msk.f32.mxu0 %vm1186_vm0, %v1187_v1  ;;  %v970_v1 = vpack.c.bf16 %v497_v48, %v496_v47 }
 0x254   :  { %971 = vmatpush3.bf16.msra.mxu0 %v970_v1 }
 0x255   :  { %972 = vmatprep.subr.bf16.mxu0 %v1185_v0 }
 0x258   :  { %974 = vmatpush3.bf16.msra.mxu0 %v973_v51 }
 0x259   :  { %975 = vmatprep.subr.bf16.mxu0 %v1185_v0 }
 0x25c   :  { %977 = vmatpush3.bf16.msra.mxu0 %v976_v54 }
 0x25d   :  { %978 = vmatprep.subr.bf16.mxu0 %v1185_v0 }
 0x260   :  { %980 = vmatpush3.bf16.msra.mxu0 %v979_v57 }
 0x261   :  { %981 = vmatprep.subr.bf16.mxu0 %v1185_v0 }
 0x264   :  { %983 = vmatpush3.bf16.msra.mxu0 %v982_v60 }
 0x265   :  { %984 = vmatprep.subr.bf16.mxu0 %v1185_v0 }
 0x268   :  { %986 = vmatpush3.bf16.msra.mxu0 %v985_v6 }
 0x269   :  { %987 = vmatprep.subr.bf16.mxu0 %v1185_v0 }
 0x26c   :  { %989 = vmatpush3.bf16.msra.mxu0 %v988_v9 }
 0x26d   :  { %990 = vmatprep.subr.bf16.mxu0 %v1185_v0 }
 0x270   :  { %992 = vmatpush3.bf16.msra.mxu0 %v991_v12 }
 0x324   :  { %v397_v62 = vpop.f32.mrb[2].mxu0 }
 0x325   :  { %v398_v63 = vadd.f32 %v610_v61, %v397_v62  ;;  %v802_v2 = vpop.f32.mrb[3].mxu0 }
 0x327   :  { %1009 = vtanh.f32 %v398_v63 }
 0x331   :  { %v1010_v3 = vpop.eup %1009 }
 0x332   :  { %836 = vmatmul.mubr.f32.vlgmr.msra.gmra.mrb[2].mxu1 %v1010_v3 }
 0x405   :  { %v491_v14 = vpop.f32.mrb[2].mxu1 }
 0x406   :  { %v492_v15 = vadd.f32 %v611_v13, %v491_v14  ;;  %v837_v16 = vpop.f32.mrb[3].mxu1 }
 0x408   :  { %1011 = vtanh.f32 %v492_v15 }
 0x412   :  { %v1012_v17 = vpop.eup %1011 }
 0x413   :  { %871 = vmatmul.mubr.f32.vlgmr.msra.gmra.mrb[4].mxu0 %v1012_v17 }
 0x4e6   :  { %v585_v19 = vpop.f32.mrb[4].mxu0 }
 0x4e7   :  { %v586_v20 = vadd.f32 %v612_v18, %v585_v19  ;;  %v872_v0 = vpop.f32.mrb[5].mxu0 }
 0x4e9   :  { %589 = vst [vmem:[#allocation13] sm:$0xff] %v586_v20 }
 0x4ea   :  { %1156 = shalt.err (!%p1153_p10)
}
 0x4eb   :  { %s1157_s3 = scalar_lea.hbm %s1424_s11, 128 }
 0x4ec   :  { %p1158_p11 = scmp.ne.s32.totalorder %s1424_s11, %s1157_s3  ;;  %p1161_p12 = scmp.lt.u32.totalorder %s1157_s3, %s1424_s11 }
 0x4ee   :  { %p1163_p13 = pnand %p1161_p12, %p1158_p11 }
 0x4f0   :  { %1166 = shalt.err (!%p1163_p13)
}
 0x4f1   :  { %599 = dma.vmem_to_hbm [thread:$0]  %s597_s13, 128, %s1424_s11, [#allocation4]  }
 0x4f2   :  { %1175 = dma.done.wait [#allocation4], 128  }
 0x4f3   :  { %1176 = vsyncadd [#allocation4], 4294967168 }
 0x4f4   :  { %603 = vsyncpa [#allocation3], 1 }
 0x4f5   :  { %604 = vsyncpa [#allocation6], 1 }
 0x4f6   :  { %605 = vsyncpa [#allocation9], 1 }
 0x4f7   :  { %606 = vsyncpa [#allocation12], 1 }
 0x4f8   :  { %607 = vsyncpa [#allocation4], 1 }

</bundles_post_ra>
